<compile_context>
chip_gen: v6e
topology: v6e:2x2x1
jax: 0.10.0
libtpu: 0.0.40
codegen_flags: <defaults>
</compile_context>

<pallas_src>
import math

import jax
import jax.numpy as jnp
from jax.experimental import pallas as pl
from jax.experimental.pallas import tpu as pltpu


def _round_up(x, m):
    return ((x + m - 1) // m) * m


def _pick_tile(n_pad, requested):
    """Largest multiple of 128 that divides n_pad and is <= requested."""
    requested = max(128, _round_up(requested, 128))
    limit = min(requested, n_pad)
    best, t = 128, 128
    while t <= limit:
        if n_pad % t == 0:
            best = t
        t += 128
    return best


def _vmem_limit_bytes(working_set_bytes):
    """Explicit scoped-VMEM request sized for the actual tiles."""
    try:
        cap = pltpu.get_tpu_info().vmem_capacity_bytes
    except Exception:  # pragma: no cover - conservative fallback (v7x size)
        cap = 64 * 1024 * 1024
    return int(min(max(2 * working_set_bytes, 32 * 1024 * 1024), (cap * 3) // 4))


# ---------------------------------------------------------------------------
# Fused kernel: out[i] = sum_k adj[i,k] @ (x[k] @ W)  (+ bias at finalize)
# ---------------------------------------------------------------------------
def _gcn_fused_kernel(adj_ref, x_ref, w_ref, b_ref, out_ref, acc_ref):
    k = pl.program_id(1)

    @pl.when(k == 0)
    def _():
        acc_ref[...] = jnp.zeros_like(acc_ref)

    # On-the-fly support tile: (TK, F_in) @ (F_in, F_out_pad), f32 accumulate on
    # the MXU, rounded to the compute dtype (matches a materialised bf16
    # support; exact no-op when compute_dtype is f32).
    sup = jnp.dot(
        x_ref[...], w_ref[...], preferred_element_type=jnp.float32
    ).astype(x_ref.dtype)

    # adj tile is cast per tile so the wrapper never needs a full N^2 astype.
    acc_ref[...] += jnp.dot(
        adj_ref[...].astype(x_ref.dtype), sup, preferred_element_type=jnp.float32
    )

    # Bias is added exactly once, on the f32 accumulator, in the finalize step.
    @pl.when(k == pl.num_programs(1) - 1)
    def _():
        out_ref[...] = (acc_ref[...] + b_ref[...]).astype(out_ref.dtype)


def graph_convolution(x, adj, weight, bias=None, *, tile_m=1024, tile_k=512,
                      compute_dtype=jnp.bfloat16):
    """GCN layer: adj @ (x @ weight) + bias. Returns float32 [N, F_out]."""
    n, f_in = x.shape
    f_out = weight.shape[1]
    if bias is None:
        bias = jnp.zeros((f_out,), jnp.float32)

    # --- tile / padding geometry -------------------------------------------
    n_pad = _round_up(n, 128)
    tm = _pick_tile(n_pad, tile_m)
    tk = _pick_tile(n_pad, tile_k)
    # v7x has two TensorCores: keep >=2 row tiles so the "parallel" axis shards.
    if n_pad // tm < 2 and n_pad >= 256:
        tm = _pick_tile(n_pad, n_pad // 2)
    f_out_pad = _round_up(f_out, 128)               # lane-dense output stores

    # --- operands at the boundary (accumulation stays f32) -----------------
    xd = x.astype(compute_dtype)
    wd = weight.astype(compute_dtype)
    if n_pad != n:
        xd = jnp.pad(xd, ((0, n_pad - n), (0, 0)))
        # Padding is required: fuse cast+pad into one pass over adj so the
        # kernel streams the cheap compute dtype.
        adj_k = jnp.pad(adj.astype(compute_dtype),
                        ((0, n_pad - n), (0, n_pad - n)))
    else:
        # No padding needed: hand adj over untouched (native dtype); the kernel
        # casts each tile, so there is zero wrapper-side N^2 traffic.
        adj_k = adj
    if f_out_pad != f_out:
        wd = jnp.pad(wd, ((0, 0), (0, f_out_pad - f_out)))
    bias2d = jnp.pad(bias.astype(jnp.float32),
                     (0, f_out_pad - f_out)).reshape(1, f_out_pad)

    cd_bytes = jnp.dtype(compute_dtype).itemsize
    adj_bytes = jnp.dtype(adj_k.dtype).itemsize

    # Per-step VMEM working set (double-buffered inputs, f32 acc, out tiles).
    working_set = (2 * tm * tk * adj_bytes
                   + 2 * tk * f_in * cd_bytes
                   + 2 * f_in * f_out_pad * cd_bytes
                   + 2 * f_out_pad * 4
                   + tm * f_out_pad * 4
                   + 2 * tm * f_out_pad * 4)

    n_row_tiles = n_pad // tm
    flops = 2 * n_pad * n_pad * f_out_pad \
        + 2 * n_row_tiles * n_pad * f_in * f_out_pad
    bytes_accessed = (n_pad * n_pad * adj_bytes
                      + n_row_tiles * n_pad * f_in * cd_bytes
                      + f_in * f_out_pad * cd_bytes
                      + n_pad * f_out_pad * 4)

    out_pad = pl.pallas_call(
        _gcn_fused_kernel,
        out_shape=jax.ShapeDtypeStruct((n_pad, f_out_pad), jnp.float32),
        grid_spec=pltpu.PrefetchScalarGridSpec(
            num_scalar_prefetch=0,
            grid=(n_pad // tm, n_pad // tk),
            in_specs=[
                pl.BlockSpec((tm, tk), lambda i, k: (i, k)),           # adj tile
                pl.BlockSpec((tk, f_in), lambda i, k: (k, 0)),         # x tile
                pl.BlockSpec((f_in, f_out_pad), lambda i, k: (0, 0)),  # W resident
                pl.BlockSpec((1, f_out_pad), lambda i, k: (0, 0)),     # bias (f32)
            ],
            out_specs=pl.BlockSpec((tm, f_out_pad), lambda i, k: (i, 0)),
            scratch_shapes=[pltpu.VMEM((tm, f_out_pad), jnp.float32)],
        ),
        compiler_params=pltpu.CompilerParams(
            dimension_semantics=("parallel", "arbitrary"),
            vmem_limit_bytes=_vmem_limit_bytes(working_set)),
        cost_estimate=pl.CostEstimate(
            flops=int(flops), transcendentals=0,
            bytes_accessed=int(bytes_accessed)),
    )(adj_k, xd, wd, bias2d)

    return out_pad[:n, :f_out]


def init_params(key, in_features, out_features):
    """Kaiming-uniform-like init matching nn.init.kaiming_uniform_ on [in, out]."""
    bound = math.sqrt(2.0) * math.sqrt(3.0 / out_features)  # fan_in = out_features
    weight = jax.random.uniform(
        key, (in_features, out_features), jnp.float32, minval=-bound, maxval=bound)
    bias = jnp.zeros((out_features,), jnp.float32)
    return weight, bias


def _make_adj(key, n):
    """Symmetric row-normalized adjacency (dense stand-in for the sparse adj)."""
    a = (jax.random.uniform(key, (n, n)) < 0.1).astype(jnp.float32)
    adj = jnp.maximum(a, a.T) + jnp.eye(n, dtype=jnp.float32)
    return adj / jnp.sum(adj, axis=1, keepdims=True)


if __name__ == "__main__":
    key = jax.random.PRNGKey(0)
    k_x, k_adj, k_w, k_x2, k_adj2 = jax.random.split(key, 5)

    # Deliberately unaligned shapes: wrapper pads N 200->256, F_out 96->128.
    N, F_IN, F_OUT = 200, 48, 96

    x = jax.random.normal(k_x, (N, F_IN), jnp.float32)
    adj = _make_adj(k_adj, N)
    weight, bias = init_params(k_w, F_IN, F_OUT)

    # --- f32 path: parity with the PyTorch module's float32 semantics -------
    out_f32 = graph_convolution(x, adj, weight, bias, compute_dtype=jnp.float32)
    jax.block_until_ready(out_f32)
    ref_f32 = jnp.dot(adj, jnp.dot(x, weight, precision="highest"),
                      precision="highest") + bias[None, :]
    assert out_f32.shape == (N, F_OUT)
    assert jnp.allclose(out_f32, ref_f32, atol=2e-3, rtol=2e-3)

    # --- bf16-operand / f32-accumulate path (throughput default) ------------
    out_bf16 = graph_convolution(x, adj, weight, bias, compute_dtype=jnp.bfloat16)
    jax.block_until_ready(out_bf16)
    xc = x.astype(jnp.bfloat16).astype(jnp.float32)
    ac = adj.astype(jnp.bfloat16).astype(jnp.float32)
    wc = weight.astype(jnp.bfloat16).astype(jnp.float32)
    sup_c = jnp.dot(xc, wc, precision="highest").astype(jnp.bfloat16).astype(jnp.float32)
    ref_bf16 = jnp.dot(ac, sup_c, precision="highest") + bias[None, :]
    assert out_bf16.shape == (N, F_OUT)
    assert jnp.allclose(out_bf16, ref_bf16, atol=1e-2, rtol=1e-2)

    # --- 128-aligned N: exercises the zero-copy adj path (in-kernel cast) ---
    N2 = 256
    x2 = jax.random.normal(k_x2, (N2, F_IN), jnp.float32)
    adj2 = _make_adj(k_adj2, N2)
    out2 = graph_convolution(x2, adj2, weight, bias, compute_dtype=jnp.bfloat16)
    jax.block_until_ready(out2)
    x2c = x2.astype(jnp.bfloat16).astype(jnp.float32)
    a2c = adj2.astype(jnp.bfloat16).astype(jnp.float32)
    sup2 = jnp.dot(x2c, wc, precision="highest").astype(jnp.bfloat16).astype(jnp.float32)
    ref2 = jnp.dot(a2c, sup2, precision="highest") + bias[None, :]
    assert out2.shape == (N2, F_OUT)
    assert jnp.allclose(out2, ref2, atol=1e-2, rtol=1e-2)

    print("KERNEL_OK")
</pallas_src>

<mosaic_0001>
module attributes {stable_mosaic.version = 11 : i64} {
  func.func @_gcn_fused_kernel(%arg0: i32, %arg1: i32, %arg2: memref<128x256xf32, #tpu.memory_space<vmem>>, %arg3: memref<256x48xf32, #tpu.memory_space<vmem>>, %arg4: memref<48x128xf32, #tpu.memory_space<vmem>>, %arg5: memref<1x128xf32, #tpu.memory_space<vmem>>, %arg6: memref<128x128xf32, #tpu.memory_space<vmem>>, %arg7: memref<128x128xf32, #tpu.memory_space<vmem>>) attributes {dimension_semantics = [#tpu.dimension_semantics<parallel>, #tpu.dimension_semantics<arbitrary>], iteration_bounds = array<i64: 2, 1>, scalar_prefetch = 0 : i64, scratch_operands = 1 : i64, tpu.core_type = #tpu.core_type<tc>, window_params = [{transform_indices = @transform_0, window_bounds = array<i64: 128, 256>}, {transform_indices = @transform_1, window_bounds = array<i64: 256, 48>}, {pipeline_mode = #tpu.pipeline_mode<synchronous>, transform_indices = @transform_2, window_bounds = array<i64: 48, 128>}, {pipeline_mode = #tpu.pipeline_mode<synchronous>, transform_indices = @transform_3, window_bounds = array<i64: 1, 128>}, {transform_indices = @transform_4, window_bounds = array<i64: 128, 128>}]} {
    %c0_i32 = arith.constant 0 : i32
    %0 = arith.cmpi eq, %arg1, %c0_i32 : i32
    %1 = arith.extui %0 : i1 to i32
    %c0_i32_0 = arith.constant 0 : i32
    %2 = arith.cmpi ne, %1, %c0_i32_0 : i32
    scf.if %2 {
      %cst_13 = arith.constant 0.000000e+00 : f32
      %14 = vector.broadcast %cst_13 : f32 to vector<128x128xf32>
      %c0_14 = arith.constant 0 : index
      %c0_15 = arith.constant 0 : index
      %15 = vector.load %arg7[%c0_14, %c0_15] : memref<128x128xf32, #tpu.memory_space<vmem>>, vector<128x128xf32>
      tpu.vector_store %arg7[%c0_14, %c0_15], %14 {strides = array<i32>} : memref<128x128xf32, #tpu.memory_space<vmem>>, vector<128x128xf32>,
    } else {
    }
    %c0 = arith.constant 0 : index
    %c0_1 = arith.constant 0 : index
    %3 = vector.load %arg3[%c0, %c0_1] : memref<256x48xf32, #tpu.memory_space<vmem>>, vector<256x48xf32>
    %c0_2 = arith.constant 0 : index
    %c0_3 = arith.constant 0 : index
    %4 = vector.load %arg4[%c0_2, %c0_3] : memref<48x128xf32, #tpu.memory_space<vmem>>, vector<48x128xf32>
    %cst = arith.constant dense<0.000000e+00> : vector<256x128xf32>
    %5 = tpu.matmul %3, %4, %cst {dimension_numbers = #tpu.dot_dimension_numbers<[1], [0], [0], [1], [0, 0, 1, 1], [], []>} : vector<256x48xf32>, vector<48x128xf32>, vector<256x128xf32> -> vector<256x128xf32>
    %c0_4 = arith.constant 0 : index
    %c0_5 = arith.constant 0 : index
    %6 = vector.load %arg7[%c0_4, %c0_5] : memref<128x128xf32, #tpu.memory_space<vmem>>, vector<128x128xf32>
    %c0_6 = arith.constant 0 : index
    %c0_7 = arith.constant 0 : index
    %7 = vector.load %arg2[%c0_6, %c0_7] : memref<128x256xf32, #tpu.memory_space<vmem>>, vector<128x256xf32>
    %cst_8 = arith.constant dense<0.000000e+00> : vector<128x128xf32>
    %8 = tpu.matmul %7, %5, %cst_8 {dimension_numbers = #tpu.dot_dimension_numbers<[1], [0], [0], [1], [0, 0, 1, 1], [], []>} : vector<128x256xf32>, vector<256x128xf32>, vector<128x128xf32> -> vector<128x128xf32>
    %9 = arith.addf %6, %8 : vector<128x128xf32>
    %c0_9 = arith.constant 0 : index
    %c0_10 = arith.constant 0 : index
    %10 = vector.load %arg7[%c0_9, %c0_10] : memref<128x128xf32, #tpu.memory_space<vmem>>, vector<128x128xf32>
    tpu.vector_store %arg7[%c0_9, %c0_10], %9 {strides = array<i32>} : memref<128x128xf32, #tpu.memory_space<vmem>>, vector<128x128xf32>,
    %c0_i32_11 = arith.constant 0 : i32
    %11 = arith.cmpi eq, %arg1, %c0_i32_11 : i32
    %12 = arith.extui %11 : i1 to i32
    %c0_i32_12 = arith.constant 0 : i32
    %13 = arith.cmpi ne, %12, %c0_i32_12 : i32
    scf.if %13 {
      %c0_13 = arith.constant 0 : index
      %c0_14 = arith.constant 0 : index
      %14 = vector.load %arg7[%c0_13, %c0_14] : memref<128x128xf32, #tpu.memory_space<vmem>>, vector<128x128xf32>
      %c0_15 = arith.constant 0 : index
      %c0_16 = arith.constant 0 : index
      %15 = vector.load %arg5[%c0_15, %c0_16] : memref<1x128xf32, #tpu.memory_space<vmem>>, vector<1x128xf32>
      %16 = vector.broadcast %15 : vector<1x128xf32> to vector<128x128xf32>
      %17 = arith.addf %14, %16 : vector<128x128xf32>
      %c0_17 = arith.constant 0 : index
      %c0_18 = arith.constant 0 : index
      %18 = vector.load %arg6[%c0_17, %c0_18] : memref<128x128xf32, #tpu.memory_space<vmem>>, vector<128x128xf32>
      tpu.vector_store %arg6[%c0_17, %c0_18], %17 {strides = array<i32>} : memref<128x128xf32, #tpu.memory_space<vmem>>, vector<128x128xf32>,
    } else {
    }
    return
  }
  func.func @transform_0(%arg0: i32, %arg1: i32) -> (i32, i32) {
    %c0_i32 = arith.constant 0 : i32
    return %arg0, %arg1 : i32, i32
  }
  func.func @transform_1(%arg0: i32, %arg1: i32) -> (i32, i32) {
    %c0_i32 = arith.constant 0 : i32
    %c0_i32_0 = arith.constant 0 : i32
    return %arg1, %c0_i32 : i32, i32
  }
  func.func @transform_2(%arg0: i32, %arg1: i32) -> (i32, i32) {
    %c0_i32 = arith.constant 0 : i32
    %c0_i32_0 = arith.constant 0 : i32
    %c0_i32_1 = arith.constant 0 : i32
    return %c0_i32, %c0_i32_0 : i32, i32
  }
  func.func @transform_3(%arg0: i32, %arg1: i32) -> (i32, i32) {
    %c0_i32 = arith.constant 0 : i32
    %c0_i32_0 = arith.constant 0 : i32
    %c0_i32_1 = arith.constant 0 : i32
    return %c0_i32, %c0_i32_0 : i32, i32
  }
  func.func @transform_4(%arg0: i32, %arg1: i32) -> (i32, i32) {
    %c0_i32 = arith.constant 0 : i32
    %c0_i32_0 = arith.constant 0 : i32
    return %arg0, %c0_i32 : i32, i32
  }
}

</mosaic_0001>

<bundles_post_ra>
// kernel: tpu_custom_call.1
= control target key start
LH: loop header
LB: loop body
LE: loop exit
PB: predicated region body
PF: predicated region fallthrough
CT: control target
= control target key end

     0   :  { %9 = vsyncpa [#allocation4], 0  ;;  %s1911_s0 = inlined_call_operand.hbm [shape: f32[256,256], index: 0, kind: input, shape index: {}]   ;;  %s1912_s1 = inlined_call_operand.vmem [shape: f32[256,48], index: 1, kind: input, shape index: {}]   ;;  %s1913_s2 = inlined_call_operand.vmem [shape: f32[48,128], index: 2, kind: input, shape index: {}]   ;;  %s1914_s3 = inlined_call_operand.vmem [shape: f32[1,128], index: 3, kind: input, shape index: {}]   ;;  %s1915_s4 = inlined_call_operand.hbm [shape: f32[256,128], index: 4, kind: output, shape index: {}]  }
   0x1   :  { %11 = vsyncpa [#allocation4 + $0x1], 0 }
   0x2   :  { %12 = vsyncpa [#allocation5], 0 }
   0x3   :  { %14 = vsyncpa [#allocation5 + $0x1], 0  ;;  %s1504_s15 = smov 0   ;;  %s1506_s16 = smov 0  }
   0x4   :  { %s1508_s17 = smov 0   ;;  %s1510_s18 = smov 0  }
   0x5   :  { %s1512_s19 = smov 0   ;;  %s1514_s20 = smov 0  }
   0x6 LB: > { %s1034_s21 = sadd.s32 4294967295, %s1471_s20   ;;  %s1035_s22 = sadd.s32 4294967294, %s1471_s20   ;;  %s1471_s20 = sphi %s1514_s20, %s20_s20   ;;  %s1467_s19 = sphi %s1512_s19, %s1926_s19   ;;  %s1463_s18 = sphi %s1510_s18, %s1925_s18   ;;  %s1459_s17 = sphi %s1508_s17, %s1924_s17   ;;  %s1455_s16 = sphi %s1506_s16, %s1923_s16   ;;  %s1451_s15 = sphi %s1504_s15, %s1922_s15  }
   0x7   : > { %s32_s23 = sadd.s32 1, %s1467_s19  ;;  %s41_s24 = sadd.s32 1, %s1459_s17 }
   0x8   : > { %p34_p0 = scmp.ge.s32.totalorder %s32_s23, 2  ;;  %p48_p1 = scmp.ne.s32.totalorder %s1459_s17, %s1455_s16 }
   0x9   : > { %p49_p2 = scmp.eq.s32.totalorder %s1471_s20, 0  ;;  %p54_p3 = scmp.ne.s32.totalorder %s1455_s16, %s1451_s15 }
   0xa   : > { %s1928_s23 = smov (%p34_p0, %s32_s23), 0  ;;  %p55_p5 = scmp.eq.s32.totalorder %s1034_s21, 0 }
   0xb   : > { %p1545_p4 = por %p49_p2, %p48_p1  ;;  %s36_s26 = ssub.s32 %s1467_s19, %s1928_s23 }
   0xc   : > { %p146_p6 = scmp.eq.s32.totalorder %s1034_s21, 1  ;;  %p39_p7 = scmp.eq.s32.totalorder %s36_s26, 0 }
   0xd   : > { %p1551_p8 = por %p55_p5, %p54_p3  ;;  %p152_p10 = scmp.eq.s32.totalorder %s1035_s22, 1 }
   0xe   : > { %p1555_p9 = por %p146_p6, %p48_p1  ;;  %p1309_p13 = scmp.lt.s32.totalorder %s1471_s20, 2 }
   0xf   : > { %s1560_s29 = scalar_select %p39_p7, %s1459_s17, %s41_s24  }
  0x10   : > { %p1562_p11 = por %p152_p10, %p54_p3  ;;  %s187_s5 = sand.u32 1, %s1459_s17  }
  0x11   : > { %s1039_s6 = sshll.u32 %s187_s5, 8  ;;  %s1085_s7 = sshll.u32 %s1467_s19, 12 }
  0x12   : > { %s200_s10 = scalar_lea.hbm %s1911_s0, %s1085_s7  ;;  %s191_s11 = scalar_lea.vmem [#allocation3], %s1039_s6 }
  0x13   : > { %s201_s12 = sshll.u32 %s191_s11, 4  ;;  %p1575_p0 = pnand %p1309_p13, %p1545_p4  ;;  %s202_s12 = int_to_ptr.vmem [resolvable:$true] %s201_s12 }
  0x14   : > { %p1043_p1 = scmp.ge.s32.totalorder %s1471_s20, 1  ;;  %s188_s14 = scalar_lea.sflag [#allocation4], %s187_s5 }
  0x15   : > { %p1365_p2 = pneg %p1575_p0  ;;  %s1376_s21 = scalar_lea.vmem %s202_s12, 4096 }
  0x16   : > { %p1377_p3 = scmp.ne.s32.totalorder %s202_s12, %s1376_s21  ;;  %s1473_s22 = smov [#allocation3]  }
  0x17   : > { %s1381_s24 = sshll.u32 %s1473_s22, 4  ;;  %s1382_s24 = int_to_ptr.vmem [resolvable:$false] %s1381_s24 }
  0x18   : > { %p1379_p5 = pnand %p1377_p3, %p1365_p2  ;;  %s1383_s26 = scalar_lea.vmem %s1382_s24, 8192 }
  0x19   : > { %p1384_p7 = scmp.lt.s32.totalorder %s202_s12, %s1382_s24  ;;  %p1385_p10 = scmp.lt.s32.totalorder %s1383_s26, %s1376_s21 }
  0x1a   : > { %p1380_p6 = pneg %p1379_p5 }
  0x1b   : > { %p1386_p12 = por %p1385_p10, %p1384_p7 }
  0x1d   : > { %p1387_p4 = pnand %p1386_p12, %p1380_p6 }
  0x1f   : > { %1390 = shalt.err (!%p1387_p4)
}
  0x20   : > { %s1474_s25 = smov 256   ;;  %s1475_s5 = smov 16  }
  0x21   : > { %1304 = dma.hbm_to_vmem [thread:$0]  (!%p1575_p0), %s200_s10, 4096, %s202_s12, %s188_s14, %s1474_s25, %s1474_s25, %s1475_s5  }
  0x22   : > { %p209_p13 = scmp.lt.s32.totalorder %s1471_s20, 3 }
  0x24   : > { %p210_p2 = pnand %p1043_p1, %p209_p13 }
  0x25   : > { %s1588_s6 = sand.u32 (!%p210_p2), 1, %s1455_s16  }
  0x26   : > { %213 = sbr.rel (%p210_p2) target bundleno = 607 (0x25f), region = 36  ;;  %s1044_s7 = sshll.u32 (!%p210_p2), %s1588_s6, 8 }
  0x27   : > { %s216_s8 = scalar_lea.sflag (!%p210_p2), [#allocation4], %s1588_s6  ;;  %s1592_s9 = scalar_lea.vmem (!%p210_p2), [#allocation3], %s1044_s7 }
  0x2b   : > { %1442 = dma.done.wait (%p1551_p8), %s216_s8, 4096  }
  0x2c   : > { %1444 = vsyncadd (%p1551_p8), %s216_s8, 4294963200  ;;  %v315_v0 = vld [vmem:[%s1913_s2 + $0x28] sm:$0xff]  ;;  %v314_v1 = vld [vmem:[%s1913_s2 + $0x20] sm:$0xff]  ;;  %vm316_vm0 = vcmask 392192   ;;  %s1045_s22 = sshll.u32 %s1588_s6, 7  ;;  %s1086_s26 = sshll.u32 %s1463_s18, 11 }
  0x2d   : > { %1205 = vmatprep.subr.mxu0 %v315_v0  ;;  %v313_v2 = vld [vmem:[%s1913_s2 + $0x18] sm:$0xff]  ;;  %v278_v3 = vld [vmem:[%s1912_s1] sm:$0xff]  ;;  %v312_v4 = vld [vmem:[%s1913_s2 + $0x10] sm:$0xff]  ;;  %s1859_s8 = scalar_lea.hbm %s1915_s4, %s1086_s26  ;;  %s922_s10 = scalar_lea.sflag [#allocation5], %s1588_s6 }
  0x2e   : > { %1206 = vmatpush3.msra.mxu0 %v315_v0  ;;  %1217 = vmatprep.mubr.msk.f32.mxu0 %vm316_vm0, %v278_v3  ;;  %v311_v5 = vld [vmem:[%s1913_s2 + $0x8] sm:$0xff]  ;;  %v310_v6 = vld [vmem:[%s1913_s2] sm:$0xff]  ;;  %v280_v8 = vld [vmem:[%s1912_s1 + $0x10] sm:$0xff]  ;;  %s1476_s18 = smov [#allocation6]  }
  0x2f   : > { %1207 = vmatprep.subr.mxu0 %v314_v1  ;;  %v279_v7 = vld [vmem:[%s1912_s1 + $0x8] sm:$0xff]  ;;  %v281_v9 = vld [vmem:[%s1912_s1 + $0x18] sm:$0xff]  ;;  %v282_v10 = vld [vmem:[%s1912_s1 + $0x20] sm:$0xff]  ;;  %s1395_s12 = sshll.u32 %s1476_s18, 4  ;;  %s1396_s12 = int_to_ptr.vmem [resolvable:$false] %s1395_s12 }
  0x30   : > { %1208 = vmatpush3.msra.mxu0 %v314_v1  ;;  %v283_v11 = vld [vmem:[%s1912_s1 + $0x28] sm:$0xff]  ;;  %v284_v12 = vld [vmem:[%s1912_s1 + $0x30] sm:$0xff]  ;;  %v285_v13 = vld [vmem:[%s1912_s1 + $0x38] sm:$0xff]  ;;  %s1397_s13 = scalar_lea.vmem %s1396_s12, 4096 }
  0x31   : > { %1209 = vmatprep.subr.mxu0 %v313_v2  ;;  %v286_v14 = vld [vmem:[%s1912_s1 + $0x40] sm:$0xff]  ;;  %v287_v15 = vld [vmem:[%s1912_s1 + $0x48] sm:$0xff]  ;;  %v288_v16 = vld [vmem:[%s1912_s1 + $0x50] sm:$0xff] }
  0x32   : > { %1210 = vmatpush3.msra.mxu0 %v313_v2  ;;  %v289_v17 = vld [vmem:[%s1912_s1 + $0x58] sm:$0xff]  ;;  %v290_v18 = vld [vmem:[%s1912_s1 + $0x60] sm:$0xff]  ;;  %v291_v19 = vld [vmem:[%s1912_s1 + $0x68] sm:$0xff] }
  0x33   : > { %1211 = vmatprep.subr.mxu0 %v312_v4  ;;  %v292_v20 = vld [vmem:[%s1912_s1 + $0x70] sm:$0xff]  ;;  %v293_v21 = vld [vmem:[%s1912_s1 + $0x78] sm:$0xff]  ;;  %v294_v22 = vld [vmem:[%s1912_s1 + $0x80] sm:$0xff] }
  0x34   : > { %1212 = vmatpush3.msra.mxu0 %v312_v4  ;;  %v295_v23 = vld [vmem:[%s1912_s1 + $0x88] sm:$0xff]  ;;  %v296_v24 = vld [vmem:[%s1912_s1 + $0x90] sm:$0xff]  ;;  %v297_v25 = vld [vmem:[%s1912_s1 + $0x98] sm:$0xff] }
  0x35   : > { %1213 = vmatprep.subr.mxu0 %v311_v5  ;;  %v298_v26 = vld [vmem:[%s1912_s1 + $0xa0] sm:$0xff]  ;;  %v299_v27 = vld [vmem:[%s1912_s1 + $0xa8] sm:$0xff]  ;;  %v300_v28 = vld [vmem:[%s1912_s1 + $0xb0] sm:$0xff] }
  0x36   : > { %1214 = vmatpush3.msra.mxu0 %v311_v5  ;;  %v301_v29 = vld [vmem:[%s1912_s1 + $0xb8] sm:$0xff]  ;;  %v302_v30 = vld [vmem:[%s1912_s1 + $0xc0] sm:$0xff]  ;;  %v303_v31 = vld [vmem:[%s1912_s1 + $0xc8] sm:$0xff] }
  0x37   : > { %1215 = vmatprep.subr.mxu0 %v310_v6  ;;  %v304_v32 = vld [vmem:[%s1912_s1 + $0xd0] sm:$0xff]  ;;  %v305_v33 = vld [vmem:[%s1912_s1 + $0xd8] sm:$0xff]  ;;  %v306_v34 = vld [vmem:[%s1912_s1 + $0xe0] sm:$0xff] }
  0x38   : > { %1216 = vmatpush3.msra.mxu0 %v310_v6  ;;  %v307_v35 = vld [vmem:[%s1912_s1 + $0xe8] sm:$0xff]  ;;  %v308_v36 = vld [vmem:[%s1912_s1 + $0xf0] sm:$0xff]  ;;  %v309_v37 = vld [vmem:[%s1912_s1 + $0xf8] sm:$0xff] }
  0x39   : > { %1218 = vmatmul.mubr.msk.f32.vlgmr.msra.gmra.mxu0 %vm316_vm0, %v279_v7  ;;  %v659_v38 = vld [vmem:[%s1592_s9 + $0x28] sm:$0xff] }
  0x3a   : > { %1220 = vmatprep.mubr.msk.f32.mxu0 %vm316_vm0, %v280_v8  ;;  %760 = vmatprep.mubr.f32.mxu1 %v659_v38  ;;  %v655_v44 = vld [vmem:[%s1592_s9 + $0x8] sm:$0xff]  ;;  %v658_v8 = vld [vmem:[%s1592_s9 + $0x20] sm:$0xff] }
  0x3d   : > { %1221 = vmatmul.mubr.msk.f32.gmra.mxu0 %vm316_vm0, %v281_v9  ;;  %v654_v9 = vld [vmem:[%s1592_s9] sm:$0xff] }
  0x3e   : > { %1223 = vmatprep.mubr.msk.f32.mxu0 %vm316_vm0, %v282_v10  ;;  %v661_v10 = vld [vmem:[%s1592_s9 + $0x38] sm:$0xff] }
  0x41   : > { %1224 = vmatmul.mubr.msk.f32.gmra.mxu0 %vm316_vm0, %v283_v11  ;;  %v657_v11 = vld [vmem:[%s1592_s9 + $0x18] sm:$0xff] }
  0x42   : > { %1226 = vmatprep.mubr.msk.f32.mxu0 %vm316_vm0, %v284_v12  ;;  %v660_v12 = vld [vmem:[%s1592_s9 + $0x30] sm:$0xff] }
  0x45   : > { %1227 = vmatmul.mubr.msk.f32.gmra.mxu0 %vm316_vm0, %v285_v13  ;;  %v656_v13 = vld [vmem:[%s1592_s9 + $0x10] sm:$0xff] }
  0x46   : > { %1229 = vmatprep.mubr.msk.f32.mxu0 %vm316_vm0, %v286_v14  ;;  %v663_v14 = vld [vmem:[%s1592_s9 + $0x48] sm:$0xff] }
  0x49   : > { %1230 = vmatmul.mubr.msk.f32.gmra.mxu0 %vm316_vm0, %v287_v15  ;;  %v662_v15 = vld [vmem:[%s1592_s9 + $0x40] sm:$0xff] }
  0x4a   : > { %1232 = vmatprep.mubr.msk.f32.mxu0 %vm316_vm0, %v288_v16  ;;  %v665_v16 = vld [vmem:[%s1592_s9 + $0x58] sm:$0xff] }
  0x4d   : > { %1233 = vmatmul.mubr.msk.f32.gmra.mxu0 %vm316_vm0, %v289_v17  ;;  %v664_v17 = vld [vmem:[%s1592_s9 + $0x50] sm:$0xff] }
  0x4e   : > { %1235 = vmatprep.mubr.msk.f32.mxu0 %vm316_vm0, %v290_v18  ;;  %v667_v18 = vld [vmem:[%s1592_s9 + $0x68] sm:$0xff] }
  0x51   : > { %1236 = vmatmul.mubr.msk.f32.gmra.mxu0 %vm316_vm0, %v291_v19  ;;  %v666_v19 = vld [vmem:[%s1592_s9 + $0x60] sm:$0xff] }
  0x52   : > { %1238 = vmatprep.mubr.msk.f32.mxu0 %vm316_vm0, %v292_v20  ;;  %v669_v20 = vld [vmem:[%s1592_s9 + $0x78] sm:$0xff] }
  0x55   : > { %1239 = vmatmul.mubr.msk.f32.gmra.mxu0 %vm316_vm0, %v293_v21  ;;  %v668_v21 = vld [vmem:[%s1592_s9 + $0x70] sm:$0xff] }
  0x56   : > { %1241 = vmatprep.mubr.msk.f32.mxu0 %vm316_vm0, %v294_v22  ;;  %v671_v22 = vld [vmem:[%s1592_s9 + $0x88] sm:$0xff] }
  0x59   : > { %1242 = vmatmul.mubr.msk.f32.gmra.mxu0 %vm316_vm0, %v295_v23  ;;  %v670_v23 = vld [vmem:[%s1592_s9 + $0x80] sm:$0xff] }
  0x5a   : > { %1244 = vmatprep.mubr.msk.f32.mxu0 %vm316_vm0, %v296_v24  ;;  %v673_v24 = vld [vmem:[%s1592_s9 + $0x98] sm:$0xff] }
  0x5d   : > { %1245 = vmatmul.mubr.msk.f32.gmra.mxu0 %vm316_vm0, %v297_v25  ;;  %v672_v25 = vld [vmem:[%s1592_s9 + $0x90] sm:$0xff] }
  0x5e   : > { %1247 = vmatprep.mubr.msk.f32.mxu0 %vm316_vm0, %v298_v26  ;;  %v675_v26 = vld [vmem:[%s1592_s9 + $0xa8] sm:$0xff] }
  0x61   : > { %1248 = vmatmul.mubr.msk.f32.gmra.mxu0 %vm316_vm0, %v299_v27  ;;  %v674_v27 = vld [vmem:[%s1592_s9 + $0xa0] sm:$0xff] }
  0x62   : > { %1250 = vmatprep.mubr.msk.f32.mxu0 %vm316_vm0, %v300_v28  ;;  %v677_v28 = vld [vmem:[%s1592_s9 + $0xb8] sm:$0xff] }
  0x65   : > { %1251 = vmatmul.mubr.msk.f32.gmra.mxu0 %vm316_vm0, %v301_v29  ;;  %v676_v29 = vld [vmem:[%s1592_s9 + $0xb0] sm:$0xff] }
  0x66   : > { %1253 = vmatprep.mubr.msk.f32.mxu0 %vm316_vm0, %v302_v30  ;;  %v679_v30 = vld [vmem:[%s1592_s9 + $0xc8] sm:$0xff] }
  0x69   : > { %1254 = vmatmul.mubr.msk.f32.gmra.mxu0 %vm316_vm0, %v303_v31  ;;  %v678_v31 = vld [vmem:[%s1592_s9 + $0xc0] sm:$0xff] }
  0x6a   : > { %1256 = vmatprep.mubr.msk.f32.mxu0 %vm316_vm0, %v304_v32  ;;  %v681_v32 = vld [vmem:[%s1592_s9 + $0xd8] sm:$0xff] }
  0x6d   : > { %1257 = vmatmul.mubr.msk.f32.gmra.mxu0 %vm316_vm0, %v305_v33  ;;  %v680_v33 = vld [vmem:[%s1592_s9 + $0xd0] sm:$0xff] }
  0x6e   : > { %1259 = vmatprep.mubr.msk.f32.mxu0 %vm316_vm0, %v306_v34  ;;  %v683_v34 = vld [vmem:[%s1592_s9 + $0xe8] sm:$0xff] }
  0x71   : > { %1260 = vmatmul.mubr.msk.f32.gmra.mxu0 %vm316_vm0, %v307_v35  ;;  %v682_v35 = vld [vmem:[%s1592_s9 + $0xe0] sm:$0xff] }
  0x72   : > { %1262 = vmatprep.mubr.msk.f32.mxu0 %vm316_vm0, %v308_v36  ;;  %v685_v36 = vld [vmem:[%s1592_s9 + $0xf8] sm:$0xff] }
  0x75   : > { %1263 = vmatmul.mubr.msk.f32.gmra.mxu0 %vm316_vm0, %v309_v37  ;;  %v684_v37 = vld [vmem:[%s1592_s9 + $0xf0] sm:$0xff]  ;;  %s1824_s9 = scalar_lea.vmem [#allocation6], %s1045_s22 }
  0x76   : > { %750 = vmatprep.mubr.f32.mxu0 %v655_v44  ;;  %s935_s25 = sshll.u32 %s1824_s9, 4  ;;  %s1861_s25 = int_to_ptr.vmem [resolvable:$true] %s935_s25 }
  0x77   : > { %s1391_s11 = scalar_lea.vmem %s1861_s25, 2048  ;;  %p1398_p1 = scmp.lt.s32.totalorder %s1861_s25, %s1396_s12 }
  0x78   : > { %p1392_p8 = scmp.ne.s32.totalorder %s1861_s25, %s1391_s11  ;;  %p1399_p3 = scmp.lt.s32.totalorder %s1397_s13, %s1391_s11 }
  0x7a   : > { %p1393_p12 = pnand %p1392_p8, %p1555_p9  ;;  %p1400_p5 = por %p1399_p3, %p1398_p1 }
  0x7c   : > { %p1394_p0 = pneg %p1393_p12 }
  0x7e   : > { %p1401_p6 = pnand %p1400_p5, %p1394_p0 }
  0xf9   : > { %v1745_v39 = vpop.f32.mrf.mxu0 }
  0xfb   : > { %v1747_v40 = vpop.f32.mrf.mxu0 }
  0xfd   : > { %v1749_v41 = vpop.f32.mrf.mxu0 }
  0xff   : > { %v1751_v42 = vpop.f32.mrf.mxu0 }
 0x101   : > { %v1753_v43 = vpop.f32.mrf.mxu0 }
 0x103   : > { %v1756_v45 = vpop.f32.mrf.mxu0 }
 0x105   : > { %v1228_v46 = vpop.f32.mrf.mxu0 }
 0x107   : > { %v1758_v47 = vpop.f32.mrf.mxu0 }
 0x109   : > { %v1231_v48 = vpop.f32.mrf.mxu0 }
 0x10b   : > { %v519_v49 = vpop.f32.mrf.mxu0 }
 0x10d   : > { %v1234_v50 = vpop.f32.mrf.mxu0 }
 0x10f   : > { %v529_v51 = vpop.f32.mrf.mxu0 }
 0x111   : > { %v1237_v52 = vpop.f32.mrf.mxu0 }
 0x113   : > { %v539_v53 = vpop.f32.mrf.mxu0 }
 0x115   : > { %v1240_v54 = vpop.f32.mrf.mxu0 }
 0x117   : > { %v549_v55 = vpop.f32.mrf.mxu0 }
 0x119   : > { %v1760_v56 = vpop.f32.mrf.mxu0 }
 0x11b   : > { %v1762_v57 = vpop.f32.mrf.mxu0 }
 0x11d   : > { %v1246_v58 = vpop.f32.mrf.mxu0 }
 0x11f   : > { %v1764_v59 = vpop.f32.mrf.mxu0 }
 0x121   : > { %v1249_v60 = vpop.f32.mrf.mxu0 }
 0x123   : > { %v579_v61 = vpop.f32.mrf.mxu0 }
 0x125   : > { %v1252_v62 = vpop.f32.mrf.mxu0 }
 0x127   : > { %v589_v63 = vpop.f32.mrf.mxu0 }
 0x129   : > { %v1255_v0 = vpop.f32.mrf.mxu0 }
 0x12b   : > { %v599_v1 = vpop.f32.mrf.mxu0 }
 0x12d   : > { %v1258_v2 = vpop.f32.mrf.mxu0 }
 0x12f   : > { %v609_v3 = vpop.f32.mrf.mxu0 }
 0x131   : > { %v1261_v4 = vpop.f32.mrf.mxu0 }
 0x133   : > { %v619_v5 = vpop.f32.mrf.mxu0 }
 0x135   : > { %v1264_v6 = vpop.f32.mrf.mxu0 }
 0x136   : > { %1125 = vmatprep.subr.mxu0 %v1264_v6  ;;  %1265 = vmatprep.subr.mxu1 %v1264_v6 }
 0x137   : > { %v629_v7 = vpop.f32.mrf.mxu0  ;;  %1126 = vmatpush3.msra.mxu0 %v1240_v54  ;;  %1281 = vmatpush3.msra.mxu1 %v1240_v54 }
 0x138   : > { %1127 = vmatprep.subr.mxu0 %v629_v7  ;;  %1266 = vmatprep.subr.mxu1 %v629_v7 }
 0x139   : > { %1128 = vmatpush3.msra.mxu0 %v549_v55  ;;  %1282 = vmatpush3.msra.mxu1 %v549_v55 }
 0x13a   : > { %1129 = vmatprep.subr.mxu0 %v1261_v4  ;;  %1267 = vmatprep.subr.mxu1 %v1261_v4 }
 0x13b   : > { %1130 = vmatpush3.msra.mxu0 %v1237_v52  ;;  %1283 = vmatpush3.msra.mxu1 %v1237_v52 }
 0x13c   : > { %1131 = vmatprep.subr.mxu0 %v619_v5  ;;  %1268 = vmatprep.subr.mxu1 %v619_v5 }
 0x13d   : > { %1132 = vmatpush3.msra.mxu0 %v539_v53  ;;  %1284 = vmatpush3.msra.mxu1 %v539_v53 }
 0x13e   : > { %1133 = vmatprep.subr.mxu0 %v1258_v2  ;;  %1269 = vmatprep.subr.mxu1 %v1258_v2 }
 0x13f   : > { %1134 = vmatpush3.msra.mxu0 %v1234_v50  ;;  %1285 = vmatpush3.msra.mxu1 %v1234_v50 }
 0x140   : > { %1135 = vmatprep.subr.mxu0 %v609_v3  ;;  %1270 = vmatprep.subr.mxu1 %v609_v3 }
 0x141   : > { %1136 = vmatpush3.msra.mxu0 %v529_v51  ;;  %1286 = vmatpush3.msra.mxu1 %v529_v51 }
 0x142   : > { %1137 = vmatprep.subr.mxu0 %v1255_v0  ;;  %1271 = vmatprep.subr.mxu1 %v1255_v0 }
 0x143   : > { %1138 = vmatpush3.msra.mxu0 %v1231_v48  ;;  %1287 = vmatpush3.msra.mxu1 %v1231_v48 }
 0x144   : > { %1139 = vmatprep.subr.mxu0 %v599_v1  ;;  %1272 = vmatprep.subr.mxu1 %v599_v1 }
 0x145   : > { %1140 = vmatpush3.msra.mxu0 %v519_v49  ;;  %1288 = vmatpush3.msra.mxu1 %v519_v49 }
 0x146   : > { %1141 = vmatprep.subr.mxu0 %v1252_v62  ;;  %1273 = vmatprep.subr.mxu1 %v1252_v62 }
 0x147   : > { %1142 = vmatpush3.msra.mxu0 %v1228_v46  ;;  %1289 = vmatpush3.msra.mxu1 %v1228_v46 }
 0x148   : > { %1143 = vmatprep.subr.mxu0 %v589_v63  ;;  %1274 = vmatprep.subr.mxu1 %v589_v63 }
 0x149   : > { %1144 = vmatpush3.msra.mxu0 %v1758_v47  ;;  %1290 = vmatpush3.msra.mxu1 %v1758_v47 }
 0x14a   : > { %1145 = vmatprep.subr.mxu0 %v1249_v60  ;;  %1275 = vmatprep.subr.mxu1 %v1249_v60 }
 0x14b   : > { %1146 = vmatpush3.msra.mxu0 %v1753_v43  ;;  %1291 = vmatpush3.msra.mxu1 %v1753_v43 }
 0x14c   : > { %1147 = vmatprep.subr.mxu0 %v579_v61  ;;  %1276 = vmatprep.subr.mxu1 %v579_v61 }
 0x14d   : > { %1148 = vmatpush3.msra.mxu0 %v1756_v45  ;;  %1292 = vmatpush3.msra.mxu1 %v1756_v45 }
 0x14e   : > { %1149 = vmatprep.subr.mxu0 %v1246_v58  ;;  %1277 = vmatprep.subr.mxu1 %v1246_v58 }
 0x14f   : > { %1150 = vmatpush3.msra.mxu0 %v1749_v41  ;;  %1293 = vmatpush3.msra.mxu1 %v1749_v41  ;;  %v1820_v41 = vld [vmem:[%s1914_s3] ss:$0 sm:$0xff] }
 0x150   : > { %1151 = vmatprep.subr.mxu0 %v1764_v59  ;;  %1278 = vmatprep.subr.mxu1 %v1764_v59 }
 0x151   : > { %1152 = vmatpush3.msra.mxu0 %v1751_v42  ;;  %1294 = vmatpush3.msra.mxu1 %v1751_v42 }
 0x152   : > { %1153 = vmatprep.subr.mxu0 %v1760_v56  ;;  %1279 = vmatprep.subr.mxu1 %v1760_v56 }
 0x153   : > { %1154 = vmatpush3.msra.mxu0 %v1745_v39  ;;  %1295 = vmatpush3.msra.mxu1 %v1745_v39 }
 0x154   : > { %1155 = vmatprep.subr.mxu0 %v1762_v57  ;;  %1280 = vmatprep.subr.mxu1 %v1762_v57 }
 0x155   : > { %1156 = vmatpush3.msra.mxu0 %v1747_v40  ;;  %1296 = vmatpush3.msra.mxu1 %v1747_v40 }
 0x156   : > { %761 = vmatmul.mubr.f32.vlgmr.msra.gmra.mxu1 %v658_v8  ;;  %751 = vmatmul.mubr.f32.vlgmr.msra.gmra.mxu0 %v654_v9 }
 0x157   : > { %765 = vmatprep.mubr.f32.mxu1 %v661_v10  ;;  %755 = vmatprep.mubr.f32.mxu0 %v657_v11 }
 0x15a   : > { %766 = vmatmul.mubr.f32.gmra.mxu1 %v660_v12  ;;  %756 = vmatmul.mubr.f32.gmra.mxu0 %v656_v13 }
 0x15b   : > { %770 = vmatprep.mubr.f32.mxu1 %v663_v14 }
 0x15e   : > { %771 = vmatmul.mubr.f32.gmra.mxu1 %v662_v15 }
 0x15f   : > { %775 = vmatprep.mubr.f32.mxu1 %v665_v16 }
 0x162   : > { %776 = vmatmul.mubr.f32.gmra.mxu1 %v664_v17 }
 0x163   : > { %780 = vmatprep.mubr.f32.mxu1 %v667_v18 }
 0x166   : > { %781 = vmatmul.mubr.f32.gmra.mxu1 %v666_v19 }
 0x167   : > { %785 = vmatprep.mubr.f32.mxu1 %v669_v20 }
 0x16a   : > { %786 = vmatmul.mubr.f32.gmra.mxu1 %v668_v21 }
 0x16b   : > { %790 = vmatprep.mubr.f32.mxu1 %v671_v22 }
 0x16e   : > { %791 = vmatmul.mubr.f32.gmra.mxu1 %v670_v23 }
 0x16f   : > { %795 = vmatprep.mubr.f32.mxu1 %v673_v24 }
 0x172   : > { %796 = vmatmul.mubr.f32.gmra.mxu1 %v672_v25 }
 0x173   : > { %800 = vmatprep.mubr.f32.mxu1 %v675_v26 }
 0x176   : > { %801 = vmatmul.mubr.f32.gmra.mxu1 %v674_v27 }
 0x177   : > { %805 = vmatprep.mubr.f32.mxu1 %v677_v28 }
 0x17a   : > { %806 = vmatmul.mubr.f32.gmra.mxu1 %v676_v29 }
 0x17b   : > { %810 = vmatprep.mubr.f32.mxu1 %v679_v30 }
 0x17e   : > { %811 = vmatmul.mubr.f32.gmra.mxu1 %v678_v31 }
 0x17f   : > { %815 = vmatprep.mubr.f32.mxu1 %v681_v32 }
 0x182   : > { %816 = vmatmul.mubr.f32.gmra.mxu1 %v680_v33 }
 0x183   : > { %820 = vmatprep.mubr.f32.mxu1 %v683_v34 }
 0x186   : > { %821 = vmatmul.mubr.f32.gmra.mxu1 %v682_v35 }
 0x187   : > { %825 = vmatprep.mubr.f32.mxu1 %v685_v36 }
 0x18a   : > { %826 = vmatmul.mubr.f32.gmra.mxu1 %v684_v37 }
 0x216   : > { %v1163_v38 = vpop.f32.mrf.mxu1  ;;  %v1157_v39 = vpop.f32.mrf.mxu0 }
 0x218   : > { %v1164_v40 = vpop.f32.mrf.mxu1  ;;  %v1158_v42 = vpop.f32.mrf.mxu0 }
 0x219   : > { %v1165_v43 = vadd.f32 %v1164_v40, %v1163_v38  ;;  %v1159_v44 = vadd.f32 %v1158_v42, %v1157_v39 }
 0x21a   : > { %v1166_v45 = vpop.f32.mrf.mxu1  ;;  %v1160_v46 = vpop.f32.mrf.mxu0 }
 0x21b   : > { %v891_v47 = vadd.f32 %v1165_v43, %v1820_v41  ;;  %v889_v48 = vadd.f32 %v1159_v44, %v1820_v41 }
 0x21c   : > { %v1167_v49 = vpop.f32.mrf.mxu1  ;;  %v1161_v50 = vpop.f32.mrf.mxu0 }
 0x21d   : > { %907 = vst [vmem:[%s1824_s9 + $0x10] sm:$0xff] %v891_v47  ;;  %v1168_v51 = vadd.f32 %v1167_v49, %v1166_v45  ;;  %905 = vst [vmem:[%s1824_s9] sm:$0xff] %v889_v48  ;;  %v1162_v52 = vadd.f32 %v1161_v50, %v1160_v46 }
 0x21e   : > { %v1169_v53 = vpop.f32.mrf.mxu1 }
 0x21f   : > { %v892_v54 = vadd.f32 %v1168_v51, %v1820_v41  ;;  %v890_v55 = vadd.f32 %v1162_v52, %v1820_v41 }
 0x220   : > { %v1170_v56 = vpop.f32.mrf.mxu1 }
 0x221   : > { %908 = vst [vmem:[%s1824_s9 + $0x18] sm:$0xff] %v892_v54  ;;  %v1171_v57 = vadd.f32 %v1170_v56, %v1169_v53  ;;  %906 = vst [vmem:[%s1824_s9 + $0x8] sm:$0xff] %v890_v55 }
 0x222   : > { %v1172_v58 = vpop.f32.mrf.mxu1 }
 0x223   : > { %v893_v59 = vadd.f32 %v1171_v57, %v1820_v41 }
 0x224   : > { %v1173_v60 = vpop.f32.mrf.mxu1 }
 0x225   : > { %909 = vst [vmem:[%s1824_s9 + $0x20] sm:$0xff] %v893_v59  ;;  %v1174_v61 = vadd.f32 %v1173_v60, %v1172_v58 }
 0x226   : > { %v1175_v62 = vpop.f32.mrf.mxu1 }
 0x227   : > { %v894_v63 = vadd.f32 %v1174_v61, %v1820_v41 }
 0x228   : > { %v1176_v0 = vpop.f32.mrf.mxu1 }
 0x229   : > { %910 = vst [vmem:[%s1824_s9 + $0x28] sm:$0xff] %v894_v63  ;;  %v1177_v1 = vadd.f32 %v1176_v0, %v1175_v62 }
 0x22a   : > { %v1178_v2 = vpop.f32.mrf.mxu1 }
 0x22b   : > { %v895_v3 = vadd.f32 %v1177_v1, %v1820_v41 }
 0x22c   : > { %v1179_v4 = vpop.f32.mrf.mxu1 }
 0x22d   : > { %911 = vst [vmem:[%s1824_s9 + $0x30] sm:$0xff] %v895_v3  ;;  %v1180_v5 = vadd.f32 %v1179_v4, %v1178_v2 }
 0x22e   : > { %v1181_v6 = vpop.f32.mrf.mxu1 }
 0x22f   : > { %v896_v7 = vadd.f32 %v1180_v5, %v1820_v41 }
 0x230   : > { %v1182_v8 = vpop.f32.mrf.mxu1 }
 0x231   : > { %912 = vst [vmem:[%s1824_s9 + $0x38] sm:$0xff] %v896_v7  ;;  %v1183_v9 = vadd.f32 %v1182_v8, %v1181_v6 }
 0x232   : > { %v1184_v10 = vpop.f32.mrf.mxu1 }
 0x233   : > { %v897_v11 = vadd.f32 %v1183_v9, %v1820_v41 }
 0x234   : > { %v1185_v12 = vpop.f32.mrf.mxu1 }
 0x235   : > { %913 = vst [vmem:[%s1824_s9 + $0x40] sm:$0xff] %v897_v11  ;;  %v1186_v13 = vadd.f32 %v1185_v12, %v1184_v10 }
 0x236   : > { %v1187_v14 = vpop.f32.mrf.mxu1 }
 0x237   : > { %v898_v15 = vadd.f32 %v1186_v13, %v1820_v41 }
 0x238   : > { %v1188_v16 = vpop.f32.mrf.mxu1 }
 0x239   : > { %914 = vst [vmem:[%s1824_s9 + $0x48] sm:$0xff] %v898_v15  ;;  %v1189_v17 = vadd.f32 %v1188_v16, %v1187_v14 }
 0x23a   : > { %v1190_v18 = vpop.f32.mrf.mxu1 }
 0x23b   : > { %v899_v19 = vadd.f32 %v1189_v17, %v1820_v41 }
 0x23c   : > { %v1191_v20 = vpop.f32.mrf.mxu1 }
 0x23d   : > { %915 = vst [vmem:[%s1824_s9 + $0x50] sm:$0xff] %v899_v19  ;;  %v1192_v21 = vadd.f32 %v1191_v20, %v1190_v18 }
 0x23e   : > { %v1193_v22 = vpop.f32.mrf.mxu1 }
 0x23f   : > { %v900_v23 = vadd.f32 %v1192_v21, %v1820_v41 }
 0x240   : > { %v1194_v24 = vpop.f32.mrf.mxu1 }
 0x241   : > { %916 = vst [vmem:[%s1824_s9 + $0x58] sm:$0xff] %v900_v23  ;;  %v1195_v25 = vadd.f32 %v1194_v24, %v1193_v22 }
 0x242   : > { %v1196_v26 = vpop.f32.mrf.mxu1 }
 0x243   : > { %v901_v27 = vadd.f32 %v1195_v25, %v1820_v41 }
 0x244   : > { %v1197_v28 = vpop.f32.mrf.mxu1 }
 0x245   : > { %917 = vst [vmem:[%s1824_s9 + $0x60] sm:$0xff] %v901_v27  ;;  %v1198_v29 = vadd.f32 %v1197_v28, %v1196_v26 }
 0x246   : > { %v1199_v30 = vpop.f32.mrf.mxu1 }
 0x247   : > { %v902_v31 = vadd.f32 %v1198_v29, %v1820_v41 }
 0x248   : > { %v1200_v32 = vpop.f32.mrf.mxu1 }
 0x249   : > { %918 = vst [vmem:[%s1824_s9 + $0x68] sm:$0xff] %v902_v31  ;;  %v1201_v33 = vadd.f32 %v1200_v32, %v1199_v30 }
 0x24a   : > { %v1202_v34 = vpop.f32.mrf.mxu1 }
 0x24b   : > { %v903_v35 = vadd.f32 %v1201_v33, %v1820_v41 }
 0x24c   : > { %v1203_v36 = vpop.f32.mrf.mxu1 }
 0x24d   : > { %919 = vst [vmem:[%s1824_s9 + $0x70] sm:$0xff] %v903_v35  ;;  %v1204_v37 = vadd.f32 %v1203_v36, %v1202_v34 }
 0x24f   : > { %v904_v38 = vadd.f32 %v1204_v37, %v1820_v41 }
 0x251   : > { %920 = vst [vmem:[%s1824_s9 + $0x78] sm:$0xff] %v904_v38 }
 0x252   : > { %1404 = shalt.err (!%p1401_p6)
}
 0x253   : > { %s1405_s14 = scalar_lea.hbm %s1859_s8, 2048  ;;  %s1409_s24 = scalar_lea.hbm %s1915_s4, 4096 }
 0x254   : > { %p1406_p7 = scmp.ne.s32.totalorder %s1859_s8, %s1405_s14  ;;  %p1410_p13 = scmp.lt.s32.totalorder %s1859_s8, %s1915_s4 }
 0x255   : > { %p1411_p2 = scmp.lt.s32.totalorder %s1409_s24, %s1405_s14 }
 0x256   : > { %p1407_p10 = pnand %p1406_p7, %p1555_p9 }
 0x257   : > { %p1412_p8 = por %p1411_p2, %p1410_p13 }
 0x258   : > { %p1408_p4 = pneg %p1407_p10 }
 0x25a   : > { %p1413_p12 = pnand %p1412_p8, %p1408_p4 }
 0x25c   : > { %1416 = shalt.err (!%p1413_p12)
}
 0x25d   : > { %s1477_s26 = smov 128   ;;  %s1478_s5 = smov 8  }
 0x25e   : > { %1299 = dma.vmem_to_hbm [thread:$0]  (%p1555_p9), %s1861_s25, 2048, %s1859_s8, %s922_s10, %s1477_s26, %s1477_s26, %s1478_s5  }
 0x25f PF: > { %s950_s7 = sand.u32 1, %s1451_s15   ;;  %p1921_p0 = scmp.ge.s32.totalorder %s1471_s20, 2 }
 0x260   : > { %s951_s11 = scalar_lea.sflag [#allocation5], %s950_s7 }
 0x261   : > { %p1306_p1 = pnand %p1921_p0, %p1562_p11 }
 0x263   : > { %p1307_p3 = pneg %p1306_p1 }
 0x265   : > { %1446 = dma.done.wait (%p1307_p3), %s951_s11, 2048  }
 0x266   : > { %1448 = vsyncadd (%p1307_p3), %s951_s11, 4294965248  ;;  %s20_s20 = sadd.s32 1, %s1471_s20   ;;  %s1922_s15 = smov %s1455_s16 }
 0x267   : > { %p17_p5 = scmp.ge.s32.totalorder %s20_s20, 4   ;;  %s1923_s16 = smov %s1459_s17 }
 0x268   : > { %s1924_s17 = smov %s1560_s29  ;;  %s1925_s18 = smov %s1467_s19 }
 0x269   : > { %s1926_s19 = smov %s1928_s23  ;;  %19 = sbr.rel (!%p17_p5) target bundleno = 6 (0x6), region = 92 }
 0x26e   :  { %956 = vsyncpa [#allocation4], 1 }
 0x26f   :  { %958 = vsyncpa [#allocation4 + $0x1], 1 }
 0x270   :  { %959 = vsyncpa [#allocation5], 1 }
 0x271   :  { %961 = vsyncpa [#allocation5 + $0x1], 1 }

</bundles_post_ra>
